<compile_context>
chip_gen: v5e
topology: v5e:2x2
jax: 0.10.0
libtpu: 0.0.40
codegen_flags: <defaults>
</compile_context>

<pallas_src>
import functools

import jax
import jax.numpy as jnp
from jax.experimental import pallas as pl
from jax.experimental.pallas import tpu as pltpu

LANES = 128
MAX_BLOCK_ROWS = 1024          # (1024,128) f32 tile = 512 KiB -> ~86% of HBM roofline
NUM_PARALLEL = 2               # leading 'parallel' axis; v7x has 2 TensorCores


def _sublane_multiple(dtype) -> int:
    # minimal sublane tiling per element width: f32->8, bf16->16, int8/fp8->32
    return {4: 8, 2: 16, 1: 32}[jnp.dtype(dtype).itemsize]


def _round_up(x, m):
    return ((x + m - 1) // m) * m


def _bce_blur_kernel(pred_ref, true_ref, out_ref, acc_ref, *,
                     inv_alpha, block_rows, blocks_per_core,
                     needs_mask, full_rows, rem_lanes):
    p = pl.program_id(0)   # parallel slice (megacore split)
    j = pl.program_id(1)   # reduction step within the slice

    @pl.when(j == 0)
    def _():
        acc_ref[...] = jnp.zeros_like(acc_ref)

    x = pred_ref[...].astype(jnp.float32)
    y = true_ref[...].astype(jnp.float32)

    # Numerically stable BCE-with-logits sharing t = exp(-|x|) with the sigmoid.
    t = jnp.exp(-jnp.abs(x))                                   # EUP: exp
    bce = jnp.maximum(x, 0.0) - x * y + jnp.log1p(t)           # EUP: log1p
    # sigmoid(x) = 1/(1+t) for x>=0,  t/(1+t) for x<0 (reuses t, saves one exp)
    sig = jnp.where(x >= 0.0, 1.0, t) / (1.0 + t)              # EUP: recip
    dx = sig - y
    af = 1.0 - jnp.exp((dx - 1.0) * inv_alpha)                 # EUP: exp
    loss = bce * af

    if needs_mask:  # static: only emitted when the flattened input was padded
        row0 = (p * blocks_per_core + j) * block_rows
        rows = row0 + jax.lax.broadcasted_iota(jnp.int32, loss.shape, 0)
        lanes = jax.lax.broadcasted_iota(jnp.int32, loss.shape, 1)
        valid = (rows < full_rows) | ((rows == full_rows) & (lanes < rem_lanes))
        loss = jnp.where(valid, loss, 0.0)

    # Vreg-wide accumulation: pure VPU add, no per-step cross-lane reduction
    # and no serialized scalar dependency chain.
    acc_ref[...] += loss

    @pl.when(j == pl.num_programs(1) - 1)
    def _():
        # One cross-sublane reduction per parallel slice, in the epilogue only.
        out_ref[...] = jnp.sum(acc_ref[...], axis=0, keepdims=True)


def bce_blur_with_logits_loss(pred, true, alpha=0.05):
    """Equivalent of BCEBlurWithLogitsLoss(alpha).forward(pred, true)."""
    assert pred.shape == true.shape
    n = pred.size
    assert n > 0

    mult = max(_sublane_multiple(pred.dtype), _sublane_multiple(true.dtype))
    rows_needed = pl.cdiv(n, LANES)
    block_rows = min(MAX_BLOCK_ROWS, _round_up(rows_needed, mult))
    total_blocks = pl.cdiv(rows_needed, block_rows)
    num_p = NUM_PARALLEL if total_blocks >= NUM_PARALLEL else 1
    total_blocks = _round_up(total_blocks, num_p)
    blocks_per_core = total_blocks // num_p
    rows_padded = total_blocks * block_rows
    n_padded = rows_padded * LANES
    n_pad = n_padded - n

    # Keep native dtype (bf16 stays 2 B/elem on the HBM path); pad only if needed.
    pred_f = jnp.ravel(pred)
    true_f = jnp.ravel(true)
    if n_pad:
        pred_f = jnp.pad(pred_f, (0, n_pad))
        true_f = jnp.pad(true_f, (0, n_pad))
    pred2 = pred_f.reshape(rows_padded, LANES)
    true2 = true_f.reshape(rows_padded, LANES)

    kernel = functools.partial(
        _bce_blur_kernel,
        inv_alpha=float(1.0 / (alpha + 1e-4)),
        block_rows=block_rows,
        blocks_per_core=blocks_per_core,
        needs_mask=(n_pad > 0),
        full_rows=n // LANES,
        rem_lanes=n % LANES,
    )

    in_spec = pl.BlockSpec(
        (block_rows, LANES),
        lambda p, j: (p * blocks_per_core + j, 0))

    bytes_in = n_padded * (pred2.dtype.itemsize + true2.dtype.itemsize)
    cost = pl.CostEstimate(
        flops=12 * n_padded,
        transcendentals=4 * n_padded,
        bytes_accessed=bytes_in + num_p * LANES * 4,
    )

    partials = pl.pallas_call(
        kernel,
        out_shape=jax.ShapeDtypeStruct((num_p, LANES), jnp.float32),
        grid_spec=pltpu.PrefetchScalarGridSpec(
            num_scalar_prefetch=0,
            grid=(num_p, blocks_per_core),
            in_specs=[in_spec, in_spec],
            out_specs=pl.BlockSpec((1, LANES), lambda p, j: (p, 0)),
            scratch_shapes=[pltpu.VMEM((block_rows, LANES), jnp.float32)],
        ),
        compiler_params=pltpu.CompilerParams(
            dimension_semantics=("parallel", "arbitrary"),
            vmem_limit_bytes=32 * 1024 * 1024,
        ),
        cost_estimate=cost,
    )(pred2, true2)

    # Tiny cross-slice combine (<= 256 floats) + the final mean divide.
    return jnp.sum(partials) / jnp.float32(n)


def _reference(pred, true, alpha=0.05):
    x = pred.astype(jnp.float32)
    y = true.astype(jnp.float32)
    bce = jnp.maximum(x, 0.0) - x * y + jnp.log1p(jnp.exp(-jnp.abs(x)))
    p = jax.nn.sigmoid(x)
    dx = p - y
    af = 1.0 - jnp.exp((dx - 1.0) / (alpha + 1e-4))
    return jnp.mean(bce * af)


if __name__ == "__main__":
    key = jax.random.PRNGKey(0)
    k1, k2, k3, k4 = jax.random.split(key, 4)

    # Small NCHW detection-head shaped test (f32, single block, no padding).
    pred = jax.random.normal(k1, (2, 4, 16, 16), dtype=jnp.float32)
    true = (jax.random.uniform(k2, (2, 4, 16, 16)) > 0.5).astype(jnp.float32)
    out = jax.block_until_ready(bce_blur_with_logits_loss(pred, true, alpha=0.05))
    ref = _reference(pred, true, alpha=0.05)
    assert jnp.allclose(out, ref, rtol=1e-4, atol=1e-6), (out, ref)

    # Larger bf16 test: exercises multi-block grid, the 2-way parallel split,
    # native-dtype streaming and the in-kernel tail mask.
    shape = (2, 3, 320, 160)
    pred_b = jax.random.normal(k3, shape, dtype=jnp.bfloat16)
    true_b = (jax.random.uniform(k4, shape) > 0.5).astype(jnp.bfloat16)
    out_b = jax.block_until_ready(
        bce_blur_with_logits_loss(pred_b, true_b, alpha=0.05))
    ref_b = _reference(pred_b, true_b, alpha=0.05)
    assert jnp.allclose(out_b, ref_b, rtol=1e-3, atol=1e-5), (out_b, ref_b)

    print("KERNEL_OK")
</pallas_src>

<mosaic_0001>
module attributes {stable_mosaic.version = 11 : i64} {
  func.func @_bce_blur_kernel(%arg0: i32, %arg1: i32, %arg2: memref<16x128xf32, #tpu.memory_space<vmem>>, %arg3: memref<16x128xf32, #tpu.memory_space<vmem>>, %arg4: memref<1x128xf32, #tpu.memory_space<vmem>>, %arg5: memref<16x128xf32, #tpu.memory_space<vmem>>) attributes {dimension_semantics = [#tpu.dimension_semantics<parallel>, #tpu.dimension_semantics<arbitrary>], iteration_bounds = array<i64: 1, 1>, scalar_prefetch = 0 : i64, scratch_operands = 1 : i64, tpu.core_type = #tpu.core_type<tc>, window_params = [{transform_indices = @transform_0, window_bounds = array<i64: 16, 128>}, {transform_indices = @transform_1, window_bounds = array<i64: 16, 128>}, {transform_indices = @transform_2, window_bounds = array<i64: 1, 128>}]} {
    %c0_i32 = arith.constant 0 : i32
    %0 = arith.cmpi eq, %arg1, %c0_i32 : i32
    %1 = arith.extui %0 : i1 to i32
    %c0_i32_0 = arith.constant 0 : i32
    %2 = arith.cmpi ne, %1, %c0_i32_0 : i32
    scf.if %2 {
      %cst_17 = arith.constant 0.000000e+00 : f32
      %37 = vector.broadcast %cst_17 : f32 to vector<16x128xf32>
      %c0_18 = arith.constant 0 : index
      %c0_19 = arith.constant 0 : index
      %38 = vector.load %arg5[%c0_18, %c0_19] : memref<16x128xf32, #tpu.memory_space<vmem>>, vector<16x128xf32>
      tpu.vector_store %arg5[%c0_18, %c0_19], %37 {strides = array<i32>} : memref<16x128xf32, #tpu.memory_space<vmem>>, vector<16x128xf32>,
    } else {
    }
    %c0 = arith.constant 0 : index
    %c0_1 = arith.constant 0 : index
    %3 = vector.load %arg2[%c0, %c0_1] : memref<16x128xf32, #tpu.memory_space<vmem>>, vector<16x128xf32>
    %c0_2 = arith.constant 0 : index
    %c0_3 = arith.constant 0 : index
    %4 = vector.load %arg3[%c0_2, %c0_3] : memref<16x128xf32, #tpu.memory_space<vmem>>, vector<16x128xf32>
    %5 = math.absf %3 : vector<16x128xf32>
    %cst = arith.constant 0.000000e+00 : f32
    %6 = vector.broadcast %cst : f32 to vector<16x128xf32>
    %7 = arith.subf %6, %5 : vector<16x128xf32>
    %8 = math.exp %7 : vector<16x128xf32>
    %cst_4 = arith.constant 0.000000e+00 : f32
    %9 = vector.broadcast %cst_4 : f32 to vector<16x128xf32>
    %10 = arith.maximumf %3, %9 : vector<16x128xf32>
    %11 = arith.mulf %3, %4 : vector<16x128xf32>
    %12 = arith.subf %10, %11 : vector<16x128xf32>
    %13 = math.log1p %8 : vector<16x128xf32>
    %14 = arith.addf %12, %13 : vector<16x128xf32>
    %cst_5 = arith.constant 0.000000e+00 : f32
    %15 = vector.broadcast %cst_5 : f32 to vector<16x128xf32>
    %16 = arith.cmpf oge, %3, %15 : vector<16x128xf32>
    %cst_6 = arith.constant 1.000000e+00 : f32
    %17 = vector.broadcast %cst_6 : f32 to vector<16x128xf32>
    %18 = arith.select %16, %17, %8 : vector<16x128xi1>, vector<16x128xf32>
    %cst_7 = arith.constant 1.000000e+00 : f32
    %19 = vector.broadcast %cst_7 : f32 to vector<16x128xf32>
    %20 = arith.addf %19, %8 : vector<16x128xf32>
    %21 = arith.divf %18, %20 : vector<16x128xf32>
    %22 = arith.subf %21, %4 : vector<16x128xf32>
    %cst_8 = arith.constant 1.000000e+00 : f32
    %23 = vector.broadcast %cst_8 : f32 to vector<16x128xf32>
    %24 = arith.subf %22, %23 : vector<16x128xf32>
    %cst_9 = arith.constant 19.9600792 : f32
    %25 = vector.broadcast %cst_9 : f32 to vector<16x128xf32>
    %26 = arith.mulf %24, %25 : vector<16x128xf32>
    %27 = math.exp %26 : vector<16x128xf32>
    %cst_10 = arith.constant 1.000000e+00 : f32
    %28 = vector.broadcast %cst_10 : f32 to vector<16x128xf32>
    %29 = arith.subf %28, %27 : vector<16x128xf32>
    %30 = arith.mulf %14, %29 : vector<16x128xf32>
    %c0_11 = arith.constant 0 : index
    %c0_12 = arith.constant 0 : index
    %31 = vector.load %arg5[%c0_11, %c0_12] : memref<16x128xf32, #tpu.memory_space<vmem>>, vector<16x128xf32>
    %32 = arith.addf %31, %30 : vector<16x128xf32>
    %c0_13 = arith.constant 0 : index
    %c0_14 = arith.constant 0 : index
    %33 = vector.load %arg5[%c0_13, %c0_14] : memref<16x128xf32, #tpu.memory_space<vmem>>, vector<16x128xf32>
    tpu.vector_store %arg5[%c0_13, %c0_14], %32 {strides = array<i32>} : memref<16x128xf32, #tpu.memory_space<vmem>>, vector<16x128xf32>,
    %c0_i32_15 = arith.constant 0 : i32
    %34 = arith.cmpi eq, %arg1, %c0_i32_15 : i32
    %35 = arith.extui %34 : i1 to i32
    %c0_i32_16 = arith.constant 0 : i32
    %36 = arith.cmpi ne, %35, %c0_i32_16 : i32
    scf.if %36 {
      %c0_17 = arith.constant 0 : index
      %c0_18 = arith.constant 0 : index
      %37 = vector.load %arg5[%c0_17, %c0_18] : memref<16x128xf32, #tpu.memory_space<vmem>>, vector<16x128xf32>
      %cst_19 = arith.constant dense<0.000000e+00> : vector<128xf32>
      %38 = vector.multi_reduction <add>, %37, %cst_19 [0] : vector<16x128xf32> to vector<128xf32>
      %39 = vector.shape_cast %38 : vector<128xf32> to vector<1x128xf32>
      %c0_20 = arith.constant 0 : index
      %c0_21 = arith.constant 0 : index
      %40 = vector.load %arg4[%c0_20, %c0_21] : memref<1x128xf32, #tpu.memory_space<vmem>>, vector<1x128xf32>
      tpu.vector_store %arg4[%c0_20, %c0_21], %39 {strides = array<i32>} : memref<1x128xf32, #tpu.memory_space<vmem>>, vector<1x128xf32>,
    } else {
    }
    return
  }
  func.func @transform_0(%arg0: i32, %arg1: i32) -> (i32, i32) {
    %c1_i32 = arith.constant 1 : i32
    %0 = arith.muli %arg0, %c1_i32 : i32
    %1 = arith.addi %0, %arg1 : i32
    %c0_i32 = arith.constant 0 : i32
    %c0_i32_0 = arith.constant 0 : i32
    return %1, %c0_i32 : i32, i32
  }
  func.func @transform_1(%arg0: i32, %arg1: i32) -> (i32, i32) {
    %c1_i32 = arith.constant 1 : i32
    %0 = arith.muli %arg0, %c1_i32 : i32
    %1 = arith.addi %0, %arg1 : i32
    %c0_i32 = arith.constant 0 : i32
    %c0_i32_0 = arith.constant 0 : i32
    return %1, %c0_i32 : i32, i32
  }
  func.func @transform_2(%arg0: i32, %arg1: i32) -> (i32, i32) {
    %c0_i32 = arith.constant 0 : i32
    %c0_i32_0 = arith.constant 0 : i32
    return %arg0, %c0_i32 : i32, i32
  }
}

</mosaic_0001>

<bundles_post_ra>
// kernel: tpu_custom_call.1
= control target key start
LH: loop header
LB: loop body
LE: loop exit
PB: predicated region body
PF: predicated region fallthrough
CT: control target
= control target key end

     0   :  { %7 = vsyncpa [#allocation4], 0  ;;  %s349_s0 = inlined_call_operand.hbm [shape: f32[16,128], index: 0, kind: input, shape index: {}]   ;;  %s350_s1 = inlined_call_operand.hbm [shape: f32[16,128], index: 1, kind: input, shape index: {}]   ;;  %s351_s2 = inlined_call_operand.hbm [shape: f32[1,128], index: 2, kind: output, shape index: {}]  }
   0x1   :  { %8 = vsyncpa [#allocation7], 0 }
   0x2   :  { %9 = vsyncpa [#allocation5], 0  ;;  %s18_s11 = sshll.u32 %s349_s0, 4  ;;  %s288_s12 = smov [#allocation3]   ;;  %s19_s11 = int_to_ptr.hbm [resolvable:$true] %s18_s11 }
   0x3   :  { %s20_s13 = sshll.u32 %s288_s12, 4  ;;  %s35_s16 = sshll.u32 %s350_s1, 4  ;;  %s21_s13 = int_to_ptr.vmem [resolvable:$true] %s20_s13  ;;  %s36_s16 = int_to_ptr.hbm [resolvable:$true] %s35_s16 }
   0x4   :  { %s289_s17 = smov 128   ;;  %s290_s18 = smov 8  }
   0x5   :  { %26 = dma.hbm_to_vmem [thread:$0]  %s19_s11, 256, %s21_s13, [#allocation4], %s289_s17, %s289_s17, %s290_s18  }
   0x6   :  { %s291_s19 = smov [#allocation6]  }
   0x7   :  { %s37_s20 = sshll.u32 %s291_s19, 4  ;;  %s38_s20 = int_to_ptr.vmem [resolvable:$true] %s37_s20 }
   0x8   :  { %43 = dma.hbm_to_vmem [thread:$0]  %s36_s16, 256, %s38_s20, [#allocation7], %s289_s17, %s289_s17, %s290_s18  }
   0x9   :  { %282 = dma.done.wait [#allocation4], 256  }
   0xa   :  { %283 = vsyncadd [#allocation4], 4294967040 }
   0xb   :  { %284 = dma.done.wait [#allocation7], 256  }
   0xc   :  { %285 = vsyncadd [#allocation7], 4294967040  ;;  %v314_v0 = vld [vmem:[#allocation3] sm:$0xff]  ;;  %v316_v1 = vld [vmem:[#allocation3 + $0x8] sm:$0xff]  ;;  %s292_s0 = smov [#allocation8]   ;;  %s176_s23 = sshll.u32 %s351_s2, 4  ;;  %s177_s23 = int_to_ptr.hbm [resolvable:$true] %s176_s23 }
   0xd   :  { %v66_v2 = vand.u32 2147483647, %v314_v0  ;;  %v67_v3 = vand.u32 2147483647, %v316_v1  ;;  %vm100_vm4 = vcmp.ge.f32.partialorder %v314_v0, 0.0  ;;  %vm101_vm5 = vcmp.ge.f32.partialorder %v316_v1, 0.0 }
   0xe   :  { %v64_v32 = vld [vmem:[#allocation6] sm:$0xff]  ;;  %v65_v35 = vld [vmem:[#allocation6 + $0x8] sm:$0xff]  ;;  %v74_v52 = vmax.f32 %v314_v0, 0.0  ;;  %v75_v53 = vmax.f32 %v316_v1, 0.0  ;;  %s174_s1 = sshll.u32 %s292_s0, 4  ;;  %s175_s1 = int_to_ptr.vmem [resolvable:$true] %s174_s1 }
   0xf   :  { %v68_v4 = vsub.f32 0.0, %v66_v2  ;;  %v69_v5 = vsub.f32 0.0, %v67_v3  ;;  %v76_v54 = vmul.f32 %v64_v32, %v314_v0  ;;  %v77_v56 = vmul.f32 %v65_v35, %v316_v1 }
  0x11   :  { %v70_v6 = vmul.f32 1.442695, %v68_v4  ;;  %v72_v7 = vmul.f32 1.442695, %v69_v5  ;;  %v78_v63 = vsub.f32 %v74_v52, %v76_v54  ;;  %v79_v2 = vsub.f32 %v75_v53, %v77_v56 }
  0x13   :  { %194 = vpow2.f32 %v70_v6 }
  0x14   :  { %196 = vpow2.f32 %v72_v7 }
  0x19   :  { %v320_v8 = vpop.eup %194 }
  0x1a   :  { %v322_v9 = vpop.eup %196  ;;  %v80_v10 = vadd.f32 1.0, %v320_v8  ;;  %v102_v28 = vsel %vm100_vm4, 1.0, %v320_v8  ;;  %v83_v36 = vmul.f32 -0.5, %v320_v8  ;;  %v86_v46 = vand.u32 2147483647, %v320_v8 }
  0x1b   :  { %v89_v11 = vadd.f32 1.0, %v322_v9  ;;  %v103_v30 = vsel %vm101_vm5, 1.0, %v322_v9  ;;  %v92_v39 = vmul.f32 -0.5, %v322_v9  ;;  %v95_v50 = vand.u32 2147483647, %v322_v9 }
  0x1c   :  { %198 = vrcp.f32 %v80_v10  ;;  %vm111_vm0 = vweird.f32 %v80_v10  ;;  %v117_v15 = vand.u32 2147483648, %v80_v10  ;;  %v115_v18 = vand.u32 2147483647, %v80_v10 }
  0x1d   :  { %200 = vrcp.f32 %v89_v11  ;;  %v132_v19 = vand.u32 2147483648, %v89_v11  ;;  %vm126_vm2 = vweird.f32 %v89_v11  ;;  %v130_v21 = vand.u32 2147483647, %v89_v11 }
  0x1e   :  { %v118_v23 = vor.u32 1.1754944e-38, %v117_v15  ;;  %vm116_vm7 = vcmp.eq.f32.partialorder %v115_v18, 8.507059e+37  ;;  %202 = vlog2.f32 %v80_v10  ;;  %v84_v43 = vadd.f32 1.0, %v83_v36 }
  0x1f   :  { %v133_v27 = vor.u32 1.1754944e-38, %v132_v19  ;;  %vm131_vm9 = vcmp.eq.f32.partialorder %v130_v21, 8.507059e+37  ;;  %204 = vlog2.f32 %v89_v11  ;;  %v93_v47 = vadd.f32 1.0, %v92_v39 }
  0x20   :  { %v85_v58 = vmul.f32 %v320_v8, %v84_v43  ;;  %vm87_vm10 = vcmp.lt.f32.partialorder %v86_v46, 0.0004427343  ;;  %vm96_vm11 = vcmp.lt.f32.partialorder %v95_v50, 0.0004427343 }
  0x21   :  { %v94_v61 = vmul.f32 %v322_v9, %v93_v47 }
  0x22   :  { %v199_v12 = vpop.eup %198 }
  0x23   :  { %v201_v13 = vpop.eup %200  ;;  %v107_v14 = vmul.f32 %v199_v12, %v80_v10  ;;  %vm112_vm1 = vweird.f32 %v199_v12 }
  0x24   :  { %v122_v16 = vmul.f32 %v201_v13, %v89_v11  ;;  %vm127_vm3 = vweird.f32 %v201_v13  ;;  %vm113_vm6 = vmor %vm111_vm0, %vm112_vm1  ;;  %v203_v45 = vpop.eup %202 }
  0x25   :  { %v108_v17 = vsub.f32 1.0, %v107_v14  ;;  %vm328_vm8 = vmor %vm126_vm2, %vm127_vm3  ;;  %v205_v49 = vpop.eup %204  ;;  %v82_v57 = vmul.f32 0.6931472, %v203_v45 }
  0x26   :  { %v123_v20 = vsub.f32 1.0, %v122_v16  ;;  %v91_v60 = vmul.f32 0.6931472, %v205_v49 }
  0x27   :  { %v109_v22 = vmul.f32 %v199_v12, %v108_v17  ;;  %v88_v3 = vsel %vm87_vm10, %v85_v58, %v82_v57 }
  0x28   :  { %v124_v24 = vmul.f32 %v201_v13, %v123_v20  ;;  %v97_v4 = vsel %vm96_vm11, %v94_v61, %v91_v60  ;;  %v98_v0 = vadd.f32 %v88_v3, %v78_v63 }
  0x29   :  { %v110_v25 = vadd.f32 %v199_v12, %v109_v22  ;;  %v99_v6 = vadd.f32 %v97_v4, %v79_v2 }
  0x2a   :  { %v125_v29 = vadd.f32 %v201_v13, %v124_v24 }
  0x2b   :  { %v114_v31 = vsel %vm113_vm6, %v199_v12, %v110_v25 }
  0x2c   :  { %v119_v33 = vsel %vm116_vm7, %v118_v23, %v114_v31  ;;  %v129_v34 = vsel %vm328_vm8, %v201_v13, %v125_v29 }
  0x2d   :  { %v120_v37 = vmul.f32 %v119_v33, %v102_v28  ;;  %v134_v38 = vsel %vm131_vm9, %v133_v27, %v129_v34 }
  0x2e   :  { %v135_v40 = vmul.f32 %v134_v38, %v103_v30 }
  0x2f   :  { %v136_v41 = vsub.f32 %v120_v37, %v64_v32 }
  0x30   :  { %v137_v42 = vsub.f32 %v135_v40, %v65_v35 }
  0x31   :  { %v187_v44 = vadd.f32 -1.0, %v136_v41 }
  0x32   :  { %v188_v48 = vadd.f32 -1.0, %v137_v42 }
  0x33   :  { %v140_v51 = vmul.f32 19.96008, %v187_v44 }
  0x34   :  { %v141_v55 = vmul.f32 19.96008, %v188_v48 }
  0x35   :  { %v142_v59 = vmul.f32 1.442695, %v140_v51 }
  0x36   :  { %v144_v62 = vmul.f32 1.442695, %v141_v55 }
  0x37   :  { %206 = vpow2.f32 %v142_v59 }
  0x38   :  { %208 = vpow2.f32 %v144_v62 }
  0x3d   :  { %v207_v5 = vpop.eup %206 }
  0x3e   :  { %v209_v1 = vpop.eup %208  ;;  %v146_v7 = vsub.f32 1.0, %v207_v5 }
  0x3f   :  { %v147_v10 = vsub.f32 1.0, %v209_v1 }
  0x40   :  { %v148_v8 = vmul.f32 %v146_v7, %v98_v0 }
  0x41   :  { %v149_v11 = vmul.f32 %v147_v10, %v99_v6 }
  0x43   :  { %v161_v12 = vadd.f32 %v149_v11, %v148_v8 }
  0x45   :  { %v162_v13 = vrot.slane %v161_v12, 4 }
  0x47   :  { %v163_v14 = vadd.f32 %v162_v13, %v161_v12 }
  0x49   :  { %v164_v9 = vrot.slane %v163_v14, 2 }
  0x4b   :  { %v165_v15 = vadd.f32 %v164_v9, %v163_v14 }
  0x4d   :  { %v166_v16 = vrot.slane %v165_v15, 1 }
  0x4f   :  { %v167_v17 = vadd.f32 %v166_v16, %v165_v15 }
  0x51   :  { %168 = vst [vmem:[#allocation8] sm:$0x1] %v167_v17 }
  0x52   :  { %179 = dma.vmem_to_hbm [thread:$0]  %s175_s1, 16, %s177_s23, [#allocation5]  }
  0x53   :  { %286 = dma.done.wait [#allocation5], 16  }
  0x54   :  { %287 = vsyncadd [#allocation5], 4294967280 }
  0x55   :  { %184 = vsyncpa [#allocation4], 1 }
  0x56   :  { %185 = vsyncpa [#allocation7], 1 }
  0x57   :  { %186 = vsyncpa [#allocation5], 1 }

</bundles_post_ra>
